<compile_context>
chip_gen: v6e
topology: v6e:2x2x1
jax: 0.10.0
libtpu: 0.0.40
codegen_flags: <defaults>
</compile_context>

<pallas_src>
import functools

import jax
import jax.numpy as jnp
from jax.experimental import pallas as pl
from jax.experimental.pallas import tpu as pltpu


def _round_up(x, m):
    return ((x + m - 1) // m) * m


def _fused_conv_kernel(x_ref, w_ref, b_ref, o_ref, xs_ref, *, k, wp):
    # x_ref : (B, Cin, Lin)      zero-padded, per-image-flattened input
    # w_ref : (Cout, K*K*Cin)    weights pre-scaled by 2, tap-major / Cin-minor columns
    # b_ref : (Cout, 1)          bias pre-scaled by 2
    # o_ref : (B, Cout, Mout)    lane-dense output (Mout is a multiple of 128)
    # xs_ref: (K*K*Cin, Mout)    VMEM scratch holding the stacked-tap (im2col) matrix
    bsz, _, mout = o_ref.shape
    cin = x_ref.shape[1]
    wv = w_ref[...]
    bias = b_ref[...]
    for i in range(bsz):                       # static unroll; B is 1 (v7x) or N (v5e/v6e)
        xv = x_ref[i]                          # (Cin, Lin)
        for t in range(k * k):                 # in-kernel im2col: 9 static lane shifts
            off = (t // k) * wp + (t % k)
            xs_ref[t * cin:(t + 1) * cin, :] = xv[:, off:off + mout]
        acc = jnp.dot(wv, xs_ref[...],
                      preferred_element_type=jnp.float32,
                      precision=jax.lax.Precision.HIGHEST)   # single MXU pass
        o_ref[i] = jnp.maximum(acc + bias, 0.0)


def model_forward(x_nchw, w1_oihw, b1):
    """Pallas implementation of Model.forward: relu(conv1(x) + conv1(x))."""
    n, cin, h, w = x_nchw.shape
    cout, _, k, _ = w1_oihw.shape
    hp, wp = h + 2, w + 2                        # conv padding = 1 each side
    mi = hp * wp                                 # 324: flattened padded grid per image
    mout = _round_up(mi, 128)                    # 384: lane-dense output width
    max_off = (k - 1) * wp + (k - 1)             # 38: largest tap lane offset
    hp2 = -(-(mout + max_off) // wp)             # 24 rows so the last tap slice stays in-bounds
    lin = hp2 * wp                               # 432: per-image flattened input length

    # ONE pad: the conv zero-border (top/left/right = 1) plus extra zero bottom rows
    # covering the lane-padded output and tap tail; the reshape is free (contiguous).
    xflat = jnp.pad(
        x_nchw, ((0, 0), (0, 0), (1, hp2 - h - 1), (1, 1))
    ).reshape(n, cin, lin)

    # Fold the doubling into the parameters: relu(2*(Wx+b)) = relu((2W)x + 2b).
    # Column order (tap-major, Cin-minor) matches the in-kernel scratch layout.
    w_flat = (2.0 * jnp.transpose(w1_oihw, (0, 2, 3, 1))).reshape(cout, k * k * cin)
    b2 = (2.0 * b1).reshape(cout, 1)

    # v7x has 2 TensorCores per chip -> keep a parallel per-image grid there.
    # v5e/v6e are single-TC -> fold the whole batch into one grid step.
    try:
        kind = jax.devices()[0].device_kind.lower()
        multi_tc = ("v7" in kind) or ("tpu7" in kind)
    except Exception:
        multi_tc = False

    if multi_tc and n > 1:
        grid, bsz, sem = (n,), 1, ("parallel",)
    else:
        grid, bsz, sem = (1,), n, ("arbitrary",)

    flops = 2 * n * mout * cout * cin * k * k
    bytes_accessed = 4 * (n * cin * lin + w_flat.size + b2.size + n * cout * mout)

    out = pl.pallas_call(
        functools.partial(_fused_conv_kernel, k=k, wp=wp),
        out_shape=jax.ShapeDtypeStruct((n, cout, mout), jnp.float32),
        grid=grid,
        in_specs=[
            pl.BlockSpec((bsz, cin, lin), lambda i: (i, 0, 0)),
            pl.BlockSpec((cout, k * k * cin), lambda i: (0, 0)),
            pl.BlockSpec((cout, 1), lambda i: (0, 0)),
        ],
        out_specs=pl.BlockSpec((bsz, cout, mout), lambda i: (i, 0, 0)),
        scratch_shapes=[pltpu.VMEM((k * k * cin, mout), jnp.float32)],
        compiler_params=pltpu.CompilerParams(dimension_semantics=sem),
        cost_estimate=pl.CostEstimate(
            flops=flops, transcendentals=0, bytes_accessed=bytes_accessed),
    )(xflat, w_flat, b2)

    # Drop lane padding and the zero-border columns; result is already NCHW-ordered.
    return out[:, :, :h * wp].reshape(n, cout, h, wp)[:, :, :, :w]


def _reference(x_nchw, w1_oihw, b1):
    y = jax.lax.conv_general_dilated(
        x_nchw, w1_oihw, window_strides=(1, 1), padding=((1, 1), (1, 1)),
        dimension_numbers=("NCHW", "OIHW", "NCHW"))
    y = y + b1.reshape(1, -1, 1, 1)
    return jnp.maximum(y + y, 0.0)


if __name__ == "__main__":
    key = jax.random.PRNGKey(0)
    kx, kw1, kb1 = jax.random.split(key, 3)

    # Small shapes consistent with the module: batch=2, Cin=3, Cout=8, 16x16, 3x3.
    N, Cin, Cout, H, W, K = 2, 3, 8, 16, 16, 3
    x = jax.random.normal(kx, (N, Cin, H, W), dtype=jnp.float32)
    w1 = jax.random.normal(kw1, (Cout, Cin, K, K), dtype=jnp.float32) * 0.1
    b1 = jax.random.normal(kb1, (Cout,), dtype=jnp.float32) * 0.1
    # TODO(synk): conv2 (3->8, 1x1, pad=1) from __init__ is dead code in forward; not materialized.

    out = jax.jit(model_forward)(x, w1, b1)
    jax.block_until_ready(out)

    ref = _reference(x, w1, b1)
    assert out.shape == (N, Cout, H, W)
    assert jnp.allclose(out, ref, atol=1e-4, rtol=1e-4)
    print("KERNEL_OK")
</pallas_src>

<mosaic_0001>
module attributes {stable_mosaic.version = 11 : i64} {
  func.func @_fused_conv_kernel(%arg0: i32, %arg1: memref<2x3x432xf32, #tpu.memory_space<vmem>>, %arg2: memref<8x27xf32, #tpu.memory_space<vmem>>, %arg3: memref<8x1xf32, #tpu.memory_space<vmem>>, %arg4: memref<2x8x384xf32, #tpu.memory_space<vmem>>, %arg5: memref<27x384xf32, #tpu.memory_space<vmem>>) attributes {dimension_semantics = [#tpu.dimension_semantics<arbitrary>], iteration_bounds = array<i64: 1>, scalar_prefetch = 0 : i64, scratch_operands = 1 : i64, tpu.core_type = #tpu.core_type<tc>, window_params = [{transform_indices = @transform_0, window_bounds = array<i64: 2, 3, 432>}, {pipeline_mode = #tpu.pipeline_mode<synchronous>, transform_indices = @transform_1, window_bounds = array<i64: 8, 27>}, {pipeline_mode = #tpu.pipeline_mode<synchronous>, transform_indices = @transform_2, window_bounds = array<i64: 8, 1>}, {transform_indices = @transform_3, window_bounds = array<i64: 2, 8, 384>}]} {
    %c0 = arith.constant 0 : index
    %c0_0 = arith.constant 0 : index
    %0 = vector.load %arg2[%c0, %c0_0] : memref<8x27xf32, #tpu.memory_space<vmem>>, vector<8x27xf32>
    %c0_1 = arith.constant 0 : index
    %c0_2 = arith.constant 0 : index
    %1 = vector.load %arg3[%c0_1, %c0_2] : memref<8x1xf32, #tpu.memory_space<vmem>>, vector<8x1xf32>
    %c0_3 = arith.constant 0 : index
    %c0_4 = arith.constant 0 : index
    %c0_5 = arith.constant 0 : index
    %2 = vector.load %arg1[%c0_3, %c0_4, %c0_5] : memref<2x3x432xf32, #tpu.memory_space<vmem>>, vector<1x3x432xf32>
    %3 = vector.shape_cast %2 : vector<1x3x432xf32> to vector<3x432xf32>
    %4 = vector.extract_strided_slice %3 {offsets = [0, 0], sizes = [3, 384], strides = [1, 1]} : vector<3x432xf32> to vector<3x384xf32>
    %c0_6 = arith.constant 0 : index
    %c0_7 = arith.constant 0 : index
    %5 = vector.load %arg5[%c0_6, %c0_7] : memref<27x384xf32, #tpu.memory_space<vmem>>, vector<3x384xf32>
    tpu.vector_store %arg5[%c0_6, %c0_7], %4 {strides = array<i32>} : memref<27x384xf32, #tpu.memory_space<vmem>>, vector<3x384xf32>,
    %6 = vector.extract_strided_slice %3 {offsets = [0, 1], sizes = [3, 384], strides = [1, 1]} : vector<3x432xf32> to vector<3x384xf32>
    %c3 = arith.constant 3 : index
    %c0_8 = arith.constant 0 : index
    %7 = vector.load %arg5[%c3, %c0_8] : memref<27x384xf32, #tpu.memory_space<vmem>>, vector<3x384xf32>
    tpu.vector_store %arg5[%c3, %c0_8], %6 {strides = array<i32>} : memref<27x384xf32, #tpu.memory_space<vmem>>, vector<3x384xf32>,
    %8 = vector.extract_strided_slice %3 {offsets = [0, 2], sizes = [3, 384], strides = [1, 1]} : vector<3x432xf32> to vector<3x384xf32>
    %c6 = arith.constant 6 : index
    %c0_9 = arith.constant 0 : index
    %9 = vector.load %arg5[%c6, %c0_9] : memref<27x384xf32, #tpu.memory_space<vmem>>, vector<3x384xf32>
    tpu.vector_store %arg5[%c6, %c0_9], %8 {strides = array<i32>} : memref<27x384xf32, #tpu.memory_space<vmem>>, vector<3x384xf32>,
    %10 = vector.extract_strided_slice %3 {offsets = [0, 18], sizes = [3, 384], strides = [1, 1]} : vector<3x432xf32> to vector<3x384xf32>
    %c9 = arith.constant 9 : index
    %c0_10 = arith.constant 0 : index
    %11 = vector.load %arg5[%c9, %c0_10] : memref<27x384xf32, #tpu.memory_space<vmem>>, vector<3x384xf32>
    tpu.vector_store %arg5[%c9, %c0_10], %10 {strides = array<i32>} : memref<27x384xf32, #tpu.memory_space<vmem>>, vector<3x384xf32>,
    %12 = vector.extract_strided_slice %3 {offsets = [0, 19], sizes = [3, 384], strides = [1, 1]} : vector<3x432xf32> to vector<3x384xf32>
    %c12 = arith.constant 12 : index
    %c0_11 = arith.constant 0 : index
    %13 = vector.load %arg5[%c12, %c0_11] : memref<27x384xf32, #tpu.memory_space<vmem>>, vector<3x384xf32>
    tpu.vector_store %arg5[%c12, %c0_11], %12 {strides = array<i32>} : memref<27x384xf32, #tpu.memory_space<vmem>>, vector<3x384xf32>,
    %14 = vector.extract_strided_slice %3 {offsets = [0, 20], sizes = [3, 384], strides = [1, 1]} : vector<3x432xf32> to vector<3x384xf32>
    %c15 = arith.constant 15 : index
    %c0_12 = arith.constant 0 : index
    %15 = vector.load %arg5[%c15, %c0_12] : memref<27x384xf32, #tpu.memory_space<vmem>>, vector<3x384xf32>
    tpu.vector_store %arg5[%c15, %c0_12], %14 {strides = array<i32>} : memref<27x384xf32, #tpu.memory_space<vmem>>, vector<3x384xf32>,
    %16 = vector.extract_strided_slice %3 {offsets = [0, 36], sizes = [3, 384], strides = [1, 1]} : vector<3x432xf32> to vector<3x384xf32>
    %c18 = arith.constant 18 : index
    %c0_13 = arith.constant 0 : index
    %17 = vector.load %arg5[%c18, %c0_13] : memref<27x384xf32, #tpu.memory_space<vmem>>, vector<3x384xf32>
    tpu.vector_store %arg5[%c18, %c0_13], %16 {strides = array<i32>} : memref<27x384xf32, #tpu.memory_space<vmem>>, vector<3x384xf32>,
    %18 = vector.extract_strided_slice %3 {offsets = [0, 37], sizes = [3, 384], strides = [1, 1]} : vector<3x432xf32> to vector<3x384xf32>
    %c21 = arith.constant 21 : index
    %c0_14 = arith.constant 0 : index
    %19 = vector.load %arg5[%c21, %c0_14] : memref<27x384xf32, #tpu.memory_space<vmem>>, vector<3x384xf32>
    tpu.vector_store %arg5[%c21, %c0_14], %18 {strides = array<i32>} : memref<27x384xf32, #tpu.memory_space<vmem>>, vector<3x384xf32>,
    %20 = vector.extract_strided_slice %3 {offsets = [0, 38], sizes = [3, 384], strides = [1, 1]} : vector<3x432xf32> to vector<3x384xf32>
    %c24 = arith.constant 24 : index
    %c0_15 = arith.constant 0 : index
    %21 = vector.load %arg5[%c24, %c0_15] : memref<27x384xf32, #tpu.memory_space<vmem>>, vector<3x384xf32>
    tpu.vector_store %arg5[%c24, %c0_15], %20 {strides = array<i32>} : memref<27x384xf32, #tpu.memory_space<vmem>>, vector<3x384xf32>,
    %c0_16 = arith.constant 0 : index
    %c0_17 = arith.constant 0 : index
    %22 = vector.load %arg5[%c0_16, %c0_17] : memref<27x384xf32, #tpu.memory_space<vmem>>, vector<27x384xf32>
    %cst = arith.constant dense<0.000000e+00> : vector<8x384xf32>
    %23 = tpu.matmul %0, %22, %cst {dimension_numbers = #tpu.dot_dimension_numbers<[1], [0], [0], [1], [0, 0, 1, 1], [], []>, precision = #tpu.contract_precision<fp32>} : vector<8x27xf32>, vector<27x384xf32>, vector<8x384xf32> -> vector<8x384xf32>
    %24 = vector.broadcast %1 : vector<8x1xf32> to vector<8x384xf32>
    %25 = arith.addf %23, %24 : vector<8x384xf32>
    %cst_18 = arith.constant 0.000000e+00 : f32
    %26 = vector.broadcast %cst_18 : f32 to vector<8x384xf32>
    %27 = arith.maximumf %25, %26 : vector<8x384xf32>
    %c0_19 = arith.constant 0 : index
    %c0_20 = arith.constant 0 : index
    %c0_21 = arith.constant 0 : index
    %28 = vector.load %arg4[%c0_19, %c0_20, %c0_21] : memref<2x8x384xf32, #tpu.memory_space<vmem>>, vector<1x8x384xf32>
    %29 = vector.shape_cast %28 : vector<1x8x384xf32> to vector<8x384xf32>
    %30 = vector.shape_cast %27 : vector<8x384xf32> to vector<1x8x384xf32>
    tpu.vector_store %arg4[%c0_19, %c0_20, %c0_21], %30 {strides = array<i32>} : memref<2x8x384xf32, #tpu.memory_space<vmem>>, vector<1x8x384xf32>,
    %c1 = arith.constant 1 : index
    %c0_22 = arith.constant 0 : index
    %c0_23 = arith.constant 0 : index
    %31 = vector.load %arg1[%c1, %c0_22, %c0_23] : memref<2x3x432xf32, #tpu.memory_space<vmem>>, vector<1x3x432xf32>
    %32 = vector.shape_cast %31 : vector<1x3x432xf32> to vector<3x432xf32>
    %33 = vector.extract_strided_slice %32 {offsets = [0, 0], sizes = [3, 384], strides = [1, 1]} : vector<3x432xf32> to vector<3x384xf32>
    %c0_24 = arith.constant 0 : index
    %c0_25 = arith.constant 0 : index
    %34 = vector.load %arg5[%c0_24, %c0_25] : memref<27x384xf32, #tpu.memory_space<vmem>>, vector<3x384xf32>
    tpu.vector_store %arg5[%c0_24, %c0_25], %33 {strides = array<i32>} : memref<27x384xf32, #tpu.memory_space<vmem>>, vector<3x384xf32>,
    %35 = vector.extract_strided_slice %32 {offsets = [0, 1], sizes = [3, 384], strides = [1, 1]} : vector<3x432xf32> to vector<3x384xf32>
    %c3_26 = arith.constant 3 : index
    %c0_27 = arith.constant 0 : index
    %36 = vector.load %arg5[%c3_26, %c0_27] : memref<27x384xf32, #tpu.memory_space<vmem>>, vector<3x384xf32>
    tpu.vector_store %arg5[%c3_26, %c0_27], %35 {strides = array<i32>} : memref<27x384xf32, #tpu.memory_space<vmem>>, vector<3x384xf32>,
    %37 = vector.extract_strided_slice %32 {offsets = [0, 2], sizes = [3, 384], strides = [1, 1]} : vector<3x432xf32> to vector<3x384xf32>
    %c6_28 = arith.constant 6 : index
    %c0_29 = arith.constant 0 : index
    %38 = vector.load %arg5[%c6_28, %c0_29] : memref<27x384xf32, #tpu.memory_space<vmem>>, vector<3x384xf32>
    tpu.vector_store %arg5[%c6_28, %c0_29], %37 {strides = array<i32>} : memref<27x384xf32, #tpu.memory_space<vmem>>, vector<3x384xf32>,
    %39 = vector.extract_strided_slice %32 {offsets = [0, 18], sizes = [3, 384], strides = [1, 1]} : vector<3x432xf32> to vector<3x384xf32>
    %c9_30 = arith.constant 9 : index
    %c0_31 = arith.constant 0 : index
    %40 = vector.load %arg5[%c9_30, %c0_31] : memref<27x384xf32, #tpu.memory_space<vmem>>, vector<3x384xf32>
    tpu.vector_store %arg5[%c9_30, %c0_31], %39 {strides = array<i32>} : memref<27x384xf32, #tpu.memory_space<vmem>>, vector<3x384xf32>,
    %41 = vector.extract_strided_slice %32 {offsets = [0, 19], sizes = [3, 384], strides = [1, 1]} : vector<3x432xf32> to vector<3x384xf32>
    %c12_32 = arith.constant 12 : index
    %c0_33 = arith.constant 0 : index
    %42 = vector.load %arg5[%c12_32, %c0_33] : memref<27x384xf32, #tpu.memory_space<vmem>>, vector<3x384xf32>
    tpu.vector_store %arg5[%c12_32, %c0_33], %41 {strides = array<i32>} : memref<27x384xf32, #tpu.memory_space<vmem>>, vector<3x384xf32>,
    %43 = vector.extract_strided_slice %32 {offsets = [0, 20], sizes = [3, 384], strides = [1, 1]} : vector<3x432xf32> to vector<3x384xf32>
    %c15_34 = arith.constant 15 : index
    %c0_35 = arith.constant 0 : index
    %44 = vector.load %arg5[%c15_34, %c0_35] : memref<27x384xf32, #tpu.memory_space<vmem>>, vector<3x384xf32>
    tpu.vector_store %arg5[%c15_34, %c0_35], %43 {strides = array<i32>} : memref<27x384xf32, #tpu.memory_space<vmem>>, vector<3x384xf32>,
    %45 = vector.extract_strided_slice %32 {offsets = [0, 36], sizes = [3, 384], strides = [1, 1]} : vector<3x432xf32> to vector<3x384xf32>
    %c18_36 = arith.constant 18 : index
    %c0_37 = arith.constant 0 : index
    %46 = vector.load %arg5[%c18_36, %c0_37] : memref<27x384xf32, #tpu.memory_space<vmem>>, vector<3x384xf32>
    tpu.vector_store %arg5[%c18_36, %c0_37], %45 {strides = array<i32>} : memref<27x384xf32, #tpu.memory_space<vmem>>, vector<3x384xf32>,
    %47 = vector.extract_strided_slice %32 {offsets = [0, 37], sizes = [3, 384], strides = [1, 1]} : vector<3x432xf32> to vector<3x384xf32>
    %c21_38 = arith.constant 21 : index
    %c0_39 = arith.constant 0 : index
    %48 = vector.load %arg5[%c21_38, %c0_39] : memref<27x384xf32, #tpu.memory_space<vmem>>, vector<3x384xf32>
    tpu.vector_store %arg5[%c21_38, %c0_39], %47 {strides = array<i32>} : memref<27x384xf32, #tpu.memory_space<vmem>>, vector<3x384xf32>,
    %49 = vector.extract_strided_slice %32 {offsets = [0, 38], sizes = [3, 384], strides = [1, 1]} : vector<3x432xf32> to vector<3x384xf32>
    %c24_40 = arith.constant 24 : index
    %c0_41 = arith.constant 0 : index
    %50 = vector.load %arg5[%c24_40, %c0_41] : memref<27x384xf32, #tpu.memory_space<vmem>>, vector<3x384xf32>
    tpu.vector_store %arg5[%c24_40, %c0_41], %49 {strides = array<i32>} : memref<27x384xf32, #tpu.memory_space<vmem>>, vector<3x384xf32>,
    %c0_42 = arith.constant 0 : index
    %c0_43 = arith.constant 0 : index
    %51 = vector.load %arg5[%c0_42, %c0_43] : memref<27x384xf32, #tpu.memory_space<vmem>>, vector<27x384xf32>
    %cst_44 = arith.constant dense<0.000000e+00> : vector<8x384xf32>
    %52 = tpu.matmul %0, %51, %cst_44 {dimension_numbers = #tpu.dot_dimension_numbers<[1], [0], [0], [1], [0, 0, 1, 1], [], []>, precision = #tpu.contract_precision<fp32>} : vector<8x27xf32>, vector<27x384xf32>, vector<8x384xf32> -> vector<8x384xf32>
    %53 = vector.broadcast %1 : vector<8x1xf32> to vector<8x384xf32>
    %54 = arith.addf %52, %53 : vector<8x384xf32>
    %cst_45 = arith.constant 0.000000e+00 : f32
    %55 = vector.broadcast %cst_45 : f32 to vector<8x384xf32>
    %56 = arith.maximumf %54, %55 : vector<8x384xf32>
    %c1_46 = arith.constant 1 : index
    %c0_47 = arith.constant 0 : index
    %c0_48 = arith.constant 0 : index
    %57 = vector.load %arg4[%c1_46, %c0_47, %c0_48] : memref<2x8x384xf32, #tpu.memory_space<vmem>>, vector<1x8x384xf32>
    %58 = vector.shape_cast %57 : vector<1x8x384xf32> to vector<8x384xf32>
    %59 = vector.shape_cast %56 : vector<8x384xf32> to vector<1x8x384xf32>
    tpu.vector_store %arg4[%c1_46, %c0_47, %c0_48], %59 {strides = array<i32>} : memref<2x8x384xf32, #tpu.memory_space<vmem>>, vector<1x8x384xf32>,
    return
  }
  func.func @transform_0(%arg0: i32) -> (i32, i32, i32) {
    %c0_i32 = arith.constant 0 : i32
    %c0_i32_0 = arith.constant 0 : i32
    %c0_i32_1 = arith.constant 0 : i32
    return %arg0, %c0_i32, %c0_i32_0 : i32, i32, i32
  }
  func.func @transform_1(%arg0: i32) -> (i32, i32) {
    %c0_i32 = arith.constant 0 : i32
    %c0_i32_0 = arith.constant 0 : i32
    %c0_i32_1 = arith.constant 0 : i32
    return %c0_i32, %c0_i32_0 : i32, i32
  }
  func.func @transform_2(%arg0: i32) -> (i32, i32) {
    %c0_i32 = arith.constant 0 : i32
    %c0_i32_0 = arith.constant 0 : i32
    %c0_i32_1 = arith.constant 0 : i32
    return %c0_i32, %c0_i32_0 : i32, i32
  }
  func.func @transform_3(%arg0: i32) -> (i32, i32, i32) {
    %c0_i32 = arith.constant 0 : i32
    %c0_i32_0 = arith.constant 0 : i32
    %c0_i32_1 = arith.constant 0 : i32
    return %arg0, %c0_i32, %c0_i32_0 : i32, i32, i32
  }
}

</mosaic_0001>

<bundles_post_ra>
// kernel: model_forward.1
= control target key start
LH: loop header
LB: loop body
LE: loop exit
PB: predicated region body
PF: predicated region fallthrough
CT: control target
= control target key end

     0   :  { %s2723_s16 = smov 90   ;;  %s2724_s17 = smov 108   ;;  %v2731_v25 = vmov 0.0   ;;  %vm192_vm0 = vcmask 736256   ;;  %vm127_vm1 = vcmask 883712   ;;  %vm152_vm2 = vcmask 752640   ;;  %s3459_s0 = inlined_call_operand.vmem [shape: f32[2,3,432], index: 0, kind: input, shape index: {}]   ;;  %s3460_s2 = inlined_call_operand.vmem [shape: f32[8,1], index: 2, kind: input, shape index: {}]   ;;  %s3461_s1 = inlined_call_operand.vmem [shape: f32[8,27], index: 1, kind: input, shape index: {}]   ;;  %s3462_s3 = inlined_call_operand.vmem [shape: f32[2,8,384], index: 3, kind: output, shape index: {}]  }
   0x1   :  { %v2757_v0 = vld [vmem:[%s3459_s0 + $0x8] sm:$0x77]  ;;  %v16_v1 = vld [vmem:[%s3459_s0] sm:$0x77]  ;;  %s2725_s18 = smov 92   ;;  %s2726_s19 = smov 91   ;;  %305 = vmatprep.mubr.f32.mxu0 %v2731_v25  ;;  %421 = vmatprep.mubr.f32.mxu1 %v2731_v25 }
   0x2   :  { %188 = vrot.lane.b32.xlu0 %v2757_v0, %s2723_s16  ;;  %24 = vst [vmem:[#allocation2 + $0x58] sm:$0x7] %v2757_v0  ;;  %184 = vrot.lane.b32.xlu1 %v16_v1, %s2723_s16  ;;  %22 = vst [vmem:[#allocation2 + $0x30] sm:$0x7] %v16_v1  ;;  %v20_v2 = vcombine.high %v16_v1, %v16_v1  ;;  %v117_v4 = vrot.slane %v2757_v0, 1  ;;  %v142_v6 = vrot.slane %v2757_v0, 6 }
   0x3   :  { %v164_v8 = vrot.slane %v2757_v0, 3  ;;  %v115_v9 = vrot.slane %v16_v1, 1  ;;  %v140_v10 = vrot.slane %v16_v1, 6  ;;  %v162_v11 = vrot.slane %v16_v1, 3  ;;  %s2727_s20 = smov 126   ;;  %s2728_s21 = smov 110  }
   0x4   :  { %23 = vst [vmem:[#allocation2] sm:$0x7] %v20_v2  ;;  %v116_v3 = vrot.slane %v20_v2, 1  ;;  %v141_v5 = vrot.slane %v20_v2, 6  ;;  %v163_v7 = vrot.slane %v20_v2, 3  ;;  %v50_v12 = vrot.slane %v2757_v0, 2 }
   0x5   :  { %v49_v13 = vrot.slane %v20_v2, 2  ;;  %v75_v14 = vrot.slane %v2757_v0, 7  ;;  %v74_v15 = vrot.slane %v20_v2, 7  ;;  %v96_v16 = vcombine.low %v2757_v0, %v2757_v0  ;;  %s2729_s22 = smov 109   ;;  %s2730_s23 = smov 127  }
   0x6   :  { %186 = vrot.lane.b32.xlu0 %v20_v2, %s2723_s16  ;;  %121 = vrot.lane.b32.xlu1 %v116_v3, %s2724_s17  ;;  %v73_v17 = vrot.slane %v16_v1, 7  ;;  %v48_v18 = vrot.slane %v16_v1, 2  ;;  %v95_v19 = vcombine.low %v16_v1, %v16_v1  ;;  %v27_v20 = vrot.slane %v20_v2, 5  ;;  %v2809_v31 = vld [vmem:[%s3459_s0 + $0x10] sm:$0x77] }
   0x7   :  { %v28_v21 = vrot.slane %v2757_v0, 5  ;;  %v26_v22 = vrot.slane %v16_v1, 5  ;;  %v25_v23 = vcombine.high %v2757_v0, %v2757_v0  ;;  %v2816_v32 = vcombine.high %v2809_v31, %v2809_v31  ;;  %v2821_v33 = vld [vmem:[%s3459_s0 + $0x18] sm:$0x77] }
   0x8   :  { %v1365_v35 = vrot.slane %v2821_v33, 1  ;;  %v1389_v37 = vrot.slane %v2821_v33, 6  ;;  %v1410_v39 = vrot.slane %v2821_v33, 3  ;;  %v1363_v40 = vrot.slane %v2809_v31, 1 }
   0x9   :  { %v118_v24 = vrot.slane %v25_v23, 1  ;;  %v143_v26 = vrot.slane %v25_v23, 6  ;;  %v165_v27 = vrot.slane %v25_v23, 3  ;;  %v51_v28 = vrot.slane %v25_v23, 2 }
   0xa   :  { %123 = vrot.lane.b32.xlu0 %v117_v4, %s2724_s17  ;;  %146 = vrot.lane.b32.xlu1 %v141_v5, %s2725_s18  ;;  %v76_v29 = vrot.slane %v25_v23, 7  ;;  %v29_v30 = vrot.slane %v25_v23, 5  ;;  %v1364_v34 = vrot.slane %v2816_v32, 1  ;;  %v1388_v36 = vrot.slane %v2816_v32, 6 }
   0xb   :  { %v1409_v38 = vrot.slane %v2816_v32, 3  ;;  %v1387_v41 = vrot.slane %v2809_v31, 6  ;;  %v1408_v42 = vrot.slane %v2809_v31, 3  ;;  %v1300_v43 = vrot.slane %v2816_v32, 2 }
   0xc   :  { %v1301_v44 = vrot.slane %v2821_v33, 2  ;;  %v1324_v45 = vrot.slane %v2816_v32, 7  ;;  %v1325_v46 = vrot.slane %v2821_v33, 7  ;;  %v1345_v47 = vcombine.low %v2821_v33, %v2821_v33 }
   0xd   :  { %v1299_v48 = vrot.slane %v2809_v31, 2  ;;  %v1323_v49 = vrot.slane %v2809_v31, 7  ;;  %v1344_v50 = vcombine.low %v2809_v31, %v2809_v31  ;;  %v1279_v51 = vrot.slane %v2816_v32, 5 }
   0xe   :  { %148 = vrot.lane.b32.xlu0 %v142_v6, %s2725_s18  ;;  %168 = vrot.lane.b32.xlu1 %v163_v7, %s2726_s19  ;;  %v1280_v52 = vrot.slane %v2821_v33, 5  ;;  %v1278_v53 = vrot.slane %v2809_v31, 5  ;;  %v1277_v54 = vcombine.high %v2821_v33, %v2821_v33  ;;  %vm223_vm3 = vcmask 1042432  }
   0xf   :  { %vm174_vm4 = vcmask 744448   ;;  %vm60_vm5 = vcmask 1031168   ;;  %vm85_vm6 = vcmask 900096   ;;  %vm105_vm7 = vcmask 891904  }
  0x10   :  { %v1366_v55 = vrot.slane %v1277_v54, 1  ;;  %v1390_v56 = vrot.slane %v1277_v54, 6  ;;  %v1411_v57 = vrot.slane %v1277_v54, 3  ;;  %v1302_v60 = vrot.slane %v1277_v54, 2 }
  0x11   :  { %v1326_v61 = vrot.slane %v1277_v54, 7  ;;  %v1281_v2 = vrot.slane %v1277_v54, 5  ;;  %vm219_vm8 = vcmask 220160   ;;  %vm38_vm9 = vcmask 1039360  }
  0x12   :  { %170 = vrot.lane.b32.xlu0 %v164_v8, %s2726_s19  ;;  %119 = vrot.lane.b32.xlu1 %v115_v9, %s2724_s17  ;;  %vm2733_vm10 = vmmov 0  }
  0x16   :  { %144 = vrot.lane.b32.xlu0 %v140_v10, %s2725_s18  ;;  %166 = vrot.lane.b32.xlu1 %v162_v11, %s2726_s19 }
  0x1a   :  { %56 = vrot.lane.b32.xlu1 %v50_v12, %s2727_s20  ;;  %54 = vrot.lane.b32.xlu0 %v49_v13, %s2727_s20 }
  0x1e   :  { %81 = vrot.lane.b32.xlu1 %v75_v14, %s2728_s21  ;;  %79 = vrot.lane.b32.xlu0 %v74_v15, %s2728_s21 }
  0x22   :  { %101 = vrot.lane.b32.xlu1 %v96_v16, %s2729_s22  ;;  %99 = vrot.lane.b32.xlu0 %v16_v1, %s2729_s22 }
  0x26   :  { %77 = vrot.lane.b32.xlu1 %v73_v17, %s2728_s21  ;;  %52 = vrot.lane.b32.xlu0 %v48_v18, %s2727_s20 }
  0x2a   :  { %97 = vrot.lane.b32.xlu0 %v95_v19, %s2729_s22  ;;  %32 = vrot.lane.b32.xlu1 %v27_v20, %s2730_s23 }
  0x2e   :  { %34 = vrot.lane.b32.xlu0 %v28_v21, %s2730_s23  ;;  %30 = vrot.lane.b32.xlu1 %v26_v22, %s2730_s23 }
  0x32   :  { %190 = vrot.lane.b32.xlu0 %v25_v23, %s2723_s16  ;;  %125 = vrot.lane.b32.xlu1 %v118_v24, %s2724_s17 }
  0x36   :  { %150 = vrot.lane.b32.xlu0 %v143_v26, %s2725_s18  ;;  %172 = vrot.lane.b32.xlu1 %v165_v27, %s2726_s19 }
  0x3a   :  { %58 = vrot.lane.b32.xlu0 %v51_v28, %s2727_s20  ;;  %83 = vrot.lane.b32.xlu1 %v76_v29, %s2728_s21 }
  0x3e   :  { %103 = vrot.lane.b32.xlu0 %v2757_v0, %s2729_s22  ;;  %36 = vrot.lane.b32.xlu1 %v29_v30, %s2730_s23 }
  0x42   :  { %1431 = vrot.lane.b32.xlu0 %v2816_v32, %s2723_s16  ;;  %1433 = vrot.lane.b32.xlu1 %v2821_v33, %s2723_s16 }
  0x46   :  { %1429 = vrot.lane.b32.xlu0 %v2809_v31, %s2723_s16  ;;  %1369 = vrot.lane.b32.xlu1 %v1364_v34, %s2724_s17 }
  0x4a   :  { %1371 = vrot.lane.b32.xlu0 %v1365_v35, %s2724_s17  ;;  %1393 = vrot.lane.b32.xlu1 %v1388_v36, %s2725_s18 }
  0x4e   :  { %1395 = vrot.lane.b32.xlu0 %v1389_v37, %s2725_s18  ;;  %1414 = vrot.lane.b32.xlu1 %v1409_v38, %s2726_s19 }
  0x52   :  { %1416 = vrot.lane.b32.xlu0 %v1410_v39, %s2726_s19  ;;  %1367 = vrot.lane.b32.xlu1 %v1363_v40, %s2724_s17  ;;  %v2732_v40 = vmov 0  }
  0x53   :  { %2714 = vset.pattern.permute.xlu0 %v2732_v40 }
  0x56   :  { %1391 = vrot.lane.b32.xlu0 %v1387_v41, %s2725_s18  ;;  %1412 = vrot.lane.b32.xlu1 %v1408_v42, %s2726_s19  ;;  %v15_v41 = vld [vmem:[%s3460_s2] sm:$0xff] }
  0x5a   :  { %1305 = vrot.lane.b32.xlu0 %v1300_v43, %s2727_s20  ;;  %1307 = vrot.lane.b32.xlu1 %v1301_v44, %s2727_s20 }
  0x5e   :  { %1329 = vrot.lane.b32.xlu0 %v1324_v45, %s2728_s21  ;;  %1331 = vrot.lane.b32.xlu1 %v1325_v46, %s2728_s21 }
  0x62   :  { %1348 = vrot.lane.b32.xlu0 %v2809_v31, %s2729_s22  ;;  %1350 = vrot.lane.b32.xlu1 %v1345_v47, %s2729_s22 }
  0x66   :  { %1303 = vrot.lane.b32.xlu0 %v1299_v48, %s2727_s20  ;;  %1327 = vrot.lane.b32.xlu1 %v1323_v49, %s2728_s21 }
  0x6a   :  { %1346 = vrot.lane.b32.xlu0 %v1344_v50, %s2729_s22  ;;  %1284 = vrot.lane.b32.xlu1 %v1279_v51, %s2730_s23 }
  0x6e   :  { %1286 = vrot.lane.b32.xlu0 %v1280_v52, %s2730_s23  ;;  %1282 = vrot.lane.b32.xlu1 %v1278_v53, %s2730_s23  ;;  %v14_v53 = vld [vmem:[%s3461_s1] sm:$0xff] }
  0x72   :  { %1435 = vrot.lane.b32.xlu0 %v1277_v54, %s2723_s16  ;;  %1373 = vrot.lane.b32.xlu1 %v1366_v55, %s2724_s17 }
  0x74   :  { %v2877_v58 = vpop.permute.xlu0 %188  ;;  %v185_v59 = vpop.permute.xlu1 %184 }
  0x76   :  { %1397 = vrot.lane.b32.xlu0 %v1390_v56, %s2725_s18  ;;  %1418 = vrot.lane.b32.xlu1 %v1411_v57, %s2726_s19  ;;  %v221_v57 = vsel %vm219_vm8, %v14_v53, 0 }
  0x78   :  { %v187_v62 = vpop.permute.xlu0 %186  ;;  %v122_v63 = vpop.permute.xlu1 %121 }
  0x79   :  { %v193_v0 = vsel %vm192_vm0, %v185_v59, %v187_v62  ;;  %v194_v1 = vsel %vm192_vm0, %v187_v62, %v2877_v58 }
  0x7a   :  { %199 = vst [vmem:[#allocation2 + $0x48] sm:$0x7] %v193_v0  ;;  %200 = vst [vmem:[#allocation2 + $0x10] sm:$0x7] %v194_v1  ;;  %1309 = vrot.lane.b32.xlu0 %v1302_v60, %s2727_s20  ;;  %1333 = vrot.lane.b32.xlu1 %v1326_v61, %s2728_s21  ;;  %v2966_v1 = vand.u32 4294901760, %v221_v57 }
  0x7c   :  { %v2886_v3 = vpop.permute.xlu0 %123  ;;  %v147_v4 = vpop.permute.xlu1 %146 }
  0x7d   :  { %v129_v5 = vsel %vm127_vm1, %v122_v63, %v2886_v3 }
  0x7e   :  { %135 = vst [vmem:[#allocation2 + $0x38] ss:$28 sps:$4 sm:$0x83] %v129_v5   ;;  %1352 = vrot.lane.b32.xlu0 %v2821_v33, %s2729_s22  ;;  %1288 = vrot.lane.b32.xlu1 %v1281_v2, %s2730_s23 }
  0x80   :  { %v2893_v6 = vpop.permute.xlu0 %148  ;;  %v169_v7 = vpop.permute.xlu1 %168 }
  0x81   :  { %v154_v8 = vsel %vm152_vm2, %v147_v4, %v2893_v6  ;;  %v212_v9 = vld [vmem:[#allocation2 + $0x10] sm:$0x7]  ;;  %v211_v10 = vld [vmem:[#allocation2 + $0x48] sm:$0x7] }
  0x82   :  { %160 = vst [vmem:[#allocation2 + $0x38] sm:$0x1c] %v154_v8  ;;  %v228_v11 = vsel %vm223_vm3, %v212_v9, 0  ;;  %v225_v12 = vsel %vm223_vm3, %v211_v10, 0  ;;  %216 = vperm.xlu0 %2714, %v15_v41   ;;  %v2972_v9 = vsub.f32 %v221_v57, %v2966_v1 }
  0x83   :  { %v2899_v13 = vand.u32 4294901760, %v228_v11  ;;  %v2901_v14 = vand.u32 4294901760, %v225_v12 }
  0x84   :  { %v2903_v15 = vpop.permute.xlu0 %170  ;;  %v120_v16 = vpop.permute.xlu1 %119 }
  0x85   :  { %v176_v17 = vsel %vm174_vm4, %v169_v7, %v2903_v15  ;;  %v128_v18 = vsel %vm127_vm1, %v120_v16, %v122_v63  ;;  %258 = vmatprep.subr.mxu0 %v2899_v13  ;;  %v2910_v19 = vsub.f32 %v228_v11, %v2899_v13  ;;  %v2913_v20 = vsub.f32 %v225_v12, %v2901_v14 }
  0x86   :  { %182 = vst [vmem:[#allocation2 + $0x38] sm:$0xe0] %v176_v17  ;;  %134 = vst [vmem:[#allocation2 + $0x8] ss:$20 sps:$4 sm:$0x83] %v128_v18   ;;  %260 = vmatpush1.msra.mxu0 %v2901_v14 }
  0x87   :  { %v343_v21 = vand.u32 4294901760, %v2910_v19  ;;  %v349_v22 = vand.u32 4294901760, %v2913_v20 }
  0x88   :  { %v145_v23 = vpop.permute.xlu0 %144  ;;  %v167_v24 = vpop.permute.xlu1 %166 }
  0x89   :  { %v153_v26 = vsel %vm152_vm2, %v145_v23, %v147_v4  ;;  %v175_v27 = vsel %vm174_vm4, %v167_v24, %v169_v7  ;;  %v344_v28 = vsub.f32 %v2910_v19, %v343_v21  ;;  %v350_v29 = vsub.f32 %v2913_v20, %v349_v22 }
  0x8a   :  { %159 = vst [vmem:[#allocation2 + $0x8] sm:$0x1c] %v153_v26  ;;  %181 = vst [vmem:[#allocation2 + $0x8] sm:$0xe0] %v175_v27  ;;  %v2985_v23 = vand.u32 4294901760, %v2972_v9 }
  0x8b   :  { %v345_v30 = vand.u32 4294901760, %v344_v28  ;;  %v351_v34 = vand.u32 4294901760, %v350_v29 }
  0x8c   :  { %v2926_v35 = vpop.permute.xlu1 %56  ;;  %v55_v36 = vpop.permute.xlu0 %54 }
  0x8d   :  { %v62_v37 = vsel %vm60_vm5, %v55_v36, %v2926_v35  ;;  %346 = vmatprep.subr.mxu1 %v345_v30  ;;  %v209_v38 = vld [vmem:[#allocation2 + $0x38] sm:$0xff] }
  0x8e   :  { %68 = vst [vmem:[#allocation2 + $0x50] ss:$-76 sps:$4 sm:$0xc1] %v62_v37   ;;  %352 = vmatpush1.msra.mxu1 %v351_v34  ;;  %v2930_v39 = vand.u32 4294901760, %v209_v38  ;;  %v309_v37 = vsub.f32 %v2972_v9, %v2985_v23 }
  0x90   :  { %262 = vmatprep.subr.mxu0 %v2930_v39  ;;  %v2936_v42 = vpop.permute.xlu1 %81  ;;  %v80_v43 = vpop.permute.xlu0 %79  ;;  %v2939_v44 = vsub.f32 %v209_v38, %v2930_v39 }
  0x91   :  { %v87_v45 = vsel %vm85_vm6, %v80_v43, %v2936_v42  ;;  %v208_v46 = vld [vmem:[#allocation2 + $0x8] sm:$0xff] }
  0x92   :  { %93 = vst [vmem:[#allocation2 + $0x50] sm:$0xe] %v87_v45  ;;  %v2943_v47 = vand.u32 4294901760, %v208_v46  ;;  %v355_v48 = vand.u32 4294901760, %v2939_v44 }
  0x94   :  { %264 = vmatpush1.msra.mxu0 %v2943_v47  ;;  %v2947_v49 = vpop.permute.xlu1 %101  ;;  %v100_v50 = vpop.permute.xlu0 %99  ;;  %v356_v51 = vsub.f32 %v2939_v44, %v355_v48  ;;  %v2953_v52 = vsub.f32 %v208_v46, %v2943_v47 }
  0x95   :  { %v107_v54 = vsel %vm105_vm7, %v100_v50, %v2947_v49 }
  0x96   :  { %113 = vst [vmem:[#allocation2 + $0x50] sm:$0x70] %v107_v54  ;;  %v357_v55 = vand.u32 4294901760, %v356_v51  ;;  %v361_v56 = vand.u32 4294901760, %v2953_v52  ;;  %v3012_v51 = vand.u32 4294901760, %v309_v37 }
  0x98   :  { %358 = vmatprep.subr.mxu1 %v357_v55  ;;  %v78_v59 = vpop.permute.xlu1 %77  ;;  %v53_v60 = vpop.permute.xlu0 %52  ;;  %v362_v61 = vsub.f32 %v2953_v52, %v361_v56 }
  0x99   :  { %v86_v62 = vsel %vm85_vm6, %v78_v59, %v80_v43  ;;  %v61_v63 = vsel %vm60_vm5, %v53_v60, %v55_v36 }
  0x9a   :  { %92 = vst [vmem:[#allocation2 + $0x18] sm:$0xe] %v86_v62  ;;  %67 = vst [vmem:[#allocation2 + $0x18] ss:$28 sps:$4 sm:$0xc1] %v61_v63   ;;  %v363_v0 = vand.u32 4294901760, %v362_v61 }
  0x9c   :  { %364 = vmatpush1.msra.mxu1 %v363_v0  ;;  %v98_v2 = vpop.permute.xlu0 %97  ;;  %v33_v4 = vpop.permute.xlu1 %32 }
  0x9d   :  { %v106_v5 = vsel %vm105_vm7, %v98_v2, %v100_v50  ;;  %v206_v7 = vld [vmem:[#allocation2 + $0x50] sm:$0xff] }
  0x9e   :  { %112 = vst [vmem:[#allocation2 + $0x18] sm:$0x70] %v106_v5  ;;  %v2969_v8 = vand.u32 4294901760, %v206_v7 }
  0xa0   :  { %266 = vmatprep.subr.mxu0 %v2969_v8  ;;  %v2975_v10 = vpop.permute.xlu0 %34  ;;  %v31_v11 = vpop.permute.xlu1 %30  ;;  %v2978_v12 = vsub.f32 %v206_v7, %v2969_v8 }
  0xa1   :  { %v40_v16 = vsel %vm38_vm9, %v33_v4, %v2975_v10  ;;  %v39_v17 = vsel %vm38_vm9, %v31_v11, %v33_v4 }
  0xa2   :  { %46 = vst [vmem:[#allocation2] sm:$0x38] %v40_v16  ;;  %45 = vst [vmem:[#allocation2 + $0x30] sm:$0x38] %v39_v17  ;;  %v367_v18 = vand.u32 4294901760, %v2978_v12 }
  0xa4   :  { %v191_v24 = vpop.permute.xlu0 %190  ;;  %v126_v26 = vpop.permute.xlu1 %125  ;;  %v368_v27 = vsub.f32 %v2978_v12, %v367_v18 }
  0xa5   :  { %v195_v28 = vsel %vm192_vm0, %v2877_v58, %v191_v24  ;;  %v130_v29 = vsel %vm127_vm1, %v2886_v3, %v126_v26  ;;  %v205_v30 = vld [vmem:[#allocation2 + $0x18] sm:$0xff] }
  0xa6   :  { %201 = vst [vmem:[#allocation2 + $0x40] sm:$0x7] %v195_v28  ;;  %136 = vst [vmem:[#allocation2 + $0x28] ss:$-4 sps:$4 sm:$0x83] %v130_v29   ;;  %v2994_v34 = vand.u32 4294901760, %v205_v30 }
  0xa7   :  { %v369_v36 = vand.u32 4294901760, %v368_v27 }
  0xa8   :  { %268 = vmatpush1.msra.mxu0 %v2994_v34  ;;  %v151_v38 = vpop.permute.xlu0 %150  ;;  %v173_v40 = vpop.permute.xlu1 %172  ;;  %v3000_v41 = vsub.f32 %v205_v30, %v2994_v34 }
  0xa9   :  { %370 = vmatprep.subr.mxu1 %v369_v36  ;;  %v155_v58 = vsel %vm152_vm2, %v2893_v6, %v151_v38  ;;  %v177_v3 = vsel %vm174_vm4, %v2903_v15, %v173_v40  ;;  %v203_v43 = vld [vmem:[#allocation2] sm:$0xff]  ;;  %v202_v45 = vld [vmem:[#allocation2 + $0x30] sm:$0xff] }
  0xaa   :  { %161 = vst [vmem:[#allocation2 + $0x28] sm:$0x1c] %v155_v58  ;;  %183 = vst [vmem:[#allocation2 + $0x28] sm:$0xe0] %v177_v3  ;;  %v3006_v46 = vand.u32 4294901760, %v203_v43  ;;  %v3009_v50 = vand.u32 4294901760, %v202_v45 }
  0xab   :  { %1275 = vst [vmem:[#allocation2] sm:$0x7] %v2816_v32  ;;  %1274 = vst [vmem:[#allocation2 + $0x30] sm:$0x7] %v2809_v31  ;;  %v373_v53 = vand.u32 4294901760, %v3000_v41 }
  0xac   :  { %v59_v6 = vpop.permute.xlu0 %58  ;;  %v84_v54 = vpop.permute.xlu1 %83  ;;  %270 = vmatprep.subr.mxu0 %v3006_v46  ;;  %v3020_v55 = vsub.f32 %v203_v43, %v3006_v46  ;;  %v3023_v32 = vsub.f32 %v202_v45, %v3009_v50 }
  0xad   :  { %v374_v15 = vsub.f32 %v3000_v41, %v373_v53  ;;  %v63_v31 = vsel %vm60_vm5, %v2926_v35, %v59_v6  ;;  %v88_v57 = vsel %vm85_vm6, %v2936_v42, %v84_v54  ;;  %272 = vmatpush1.msra.mxu0 %v3009_v50 }
  0xae   :  { %69 = vst [vmem:[#allocation2 + $0x20] ss:$60 sps:$4 sm:$0xc1] %v63_v31   ;;  %94 = vst [vmem:[#allocation2 + $0x20] sm:$0xe] %v88_v57  ;;  %455 = vmatprep.subr.mxu0 %v2910_v19  ;;  %311 = vmatmul.mubr.f32.vlgmr.msra.gmra.mxu0 %v3012_v51  ;;  %v379_v60 = vand.u32 4294901760, %v3020_v55 }
  0xaf   :  { %v375_v59 = vand.u32 4294901760, %v374_v15  ;;  %v385_v61 = vand.u32 4294901760, %v3023_v32  ;;  %458 = vmatpush1.msra.mxu0 %v2913_v20  ;;  %509 = vmatprep.mubr.f32.mxu0 %v2731_v25 }
  0xb0   :  { %v104_v35 = vpop.permute.xlu0 %103  ;;  %v37_v42 = vpop.permute.xlu1 %36  ;;  %461 = vmatprep.subr.mxu0 %v2939_v44  ;;  %v380_v62 = vsub.f32 %v3020_v55, %v379_v60 }
  0xb1   :  { %376 = vmatpush1.msra.mxu1 %v375_v59  ;;  %v386_v63 = vsub.f32 %v3023_v32, %v385_v61  ;;  %v108_v0 = vsel %vm105_vm7, %v2947_v49, %v104_v35  ;;  %v41_v2 = vsel %vm38_vm9, %v2975_v10, %v37_v42  ;;  %464 = vmatpush1.msra.mxu0 %v2953_v52  ;;  %v213_v49 = vld [vmem:[#allocation2 + $0x40] sm:$0x7]  ;;  %v210_v19 = vld [vmem:[#allocation2 + $0x28] sm:$0xff] }
  0xb2   :  { %114 = vst [vmem:[#allocation2 + $0x20] sm:$0x70] %v108_v0  ;;  %47 = vst [vmem:[#allocation2 + $0x58] sm:$0x38] %v41_v2  ;;  %467 = vmatprep.subr.mxu0 %v2978_v12  ;;  %v381_v4 = vand.u32 4294901760, %v380_v62  ;;  %v231_v16 = vsel %vm223_vm3, %v213_v49, 0 }
  0xb3   :  { %v387_v5 = vand.u32 4294901760, %v386_v63  ;;  %470 = vmatpush1.msra.mxu0 %v3000_v41  ;;  %v3068_v27 = vand.u32 4294901760, %v231_v16 }
  0xb4   :  { %v1432_v7 = vpop.permute.xlu0 %1431  ;;  %v3046_v11 = vpop.permute.xlu1 %1433  ;;  %382 = vmatprep.subr.mxu1 %v381_v4  ;;  %473 = vmatprep.subr.mxu0 %v3020_v55 }
  0xb5   :  { %v1438_v10 = vsel %vm192_vm0, %v1432_v7, %v3046_v11  ;;  %388 = vmatpush1.msra.mxu1 %v387_v5  ;;  %476 = vmatpush1.msra.mxu0 %v3023_v32 }
  0xb6   :  { %1444 = vst [vmem:[#allocation2 + $0x10] sm:$0x7] %v1438_v10  ;;  %543 = vmatprep.subr.mxu1 %v2899_v13  ;;  %627 = vmatprep.subr.mxu0 %v343_v21 }
  0xb7   :  { %423 = vmatmul.mubr.f32.vlgmr.msra.gmra.mxu1 %v2966_v1  ;;  %512 = vmatmul.mubr.f32.vlgmr.msra.gmra.mxu0 %v2972_v9 }
  0xb8   :  { %545 = vmatpush1.msra.mxu1 %v2901_v14  ;;  %631 = vmatpush1.msra.mxu0 %v349_v22  ;;  %v1430_v17 = vpop.permute.xlu0 %1429  ;;  %v1370_v24 = vpop.permute.xlu1 %1369 }
  0xb9   :  { %v1437_v26 = vsel %vm192_vm0, %v1430_v17, %v1432_v7  ;;  %547 = vmatprep.subr.mxu1 %v2930_v39  ;;  %635 = vmatprep.subr.mxu0 %v355_v48  ;;  %v204_v21 = vld [vmem:[#allocation2 + $0x58] sm:$0xff]  ;;  %v207_v20 = vld [vmem:[#allocation2 + $0x20] sm:$0xff]  ;;  %v3079_v48 = vand.u32 4294901760, %v210_v19 }
  0xba   :  { %1443 = vst [vmem:[#allocation2 + $0x48] sm:$0x7] %v1437_v26  ;;  %549 = vmatpush1.msra.mxu1 %v2943_v47  ;;  %639 = vmatpush1.msra.mxu0 %v361_v56  ;;  %1276 = vst [vmem:[#allocation2 + $0x58] sm:$0x7] %v2821_v33  ;;  %v3086_v33 = vsub.f32 %v231_v16, %v3068_v27  ;;  %v3088_v56 = vand.u32 4294901760, %v207_v20  ;;  %v3096_v28 = vand.u32 4294901760, %v204_v21 }
  0xbb   :  { %551 = vmatprep.subr.mxu1 %v2969_v8  ;;  %643 = vmatprep.subr.mxu0 %v367_v18  ;;  %v3099_v29 = vsub.f32 %v210_v19, %v3079_v48 }
  0xbc   :  { %553 = vmatpush1.msra.mxu1 %v2994_v34  ;;  %647 = vmatpush1.msra.mxu0 %v373_v53  ;;  %v3077_v22 = vpop.permute.xlu0 %1371  ;;  %v1394_v44 = vpop.permute.xlu1 %1393  ;;  %v3109_v36 = vsub.f32 %v207_v20, %v3088_v56  ;;  %v3119_v40 = vsub.f32 %v204_v21, %v3096_v28 }
  0xbd   :  { %v1376_v52 = vsel %vm127_vm1, %v1370_v24, %v3077_v22  ;;  %555 = vmatprep.subr.mxu1 %v3006_v46  ;;  %651 = vmatprep.subr.mxu0 %v379_v60  ;;  %v1456_v57 = vld [vmem:[#allocation2 + $0x10] sm:$0x7] }
  0xbe   :  { %1382 = vst [vmem:[#allocation2 + $0x38] ss:$28 sps:$4 sm:$0x83] %v1376_v52   ;;  %557 = vmatpush1.msra.mxu1 %v3009_v50  ;;  %655 = vmatpush1.msra.mxu0 %v385_v61  ;;  %v896_v58 = vand.u32 4294901760, %v3109_v36  ;;  %v903_v43 = vand.u32 4294901760, %v3119_v40  ;;  %v1462_v62 = vsel %vm223_vm3, %v1456_v57, 0 }
  0xbf   :  { %590 = vmatprep.mubr.f32.mxu1 %v2731_v25  ;;  %688 = vmatprep.mubr.f32.mxu0 %v2731_v25  ;;  %v3187_v7 = vand.u32 4294901760, %v1462_v62 }
  0xc0   :  { %721 = vmatprep.subr.mxu1 %v2899_v13  ;;  %2571 = vmatprep.subr.mxu0 %v2731_v25  ;;  %v3094_v12 = vpop.permute.xlu0 %1395  ;;  %v1415_v18 = vpop.permute.xlu1 %1414  ;;  %v882_v13 = vand.u32 4294901760, %v3086_v33  ;;  %v897_v53 = vsub.f32 %v3109_v36, %v896_v58  ;;  %v904_v55 = vsub.f32 %v3119_v40, %v903_v43 }
  0xc1   :  { %594 = vmatmul.mubr.f32.vlgmr.msra.gmra.mxu1 %v2985_v23  ;;  %690 = vmatmul.mubr.f32.vlgmr.msra.gmra.mxu0 %v2966_v1  ;;  %v1400_v30 = vsel %vm152_vm2, %v1394_v44, %v3094_v12  ;;  %v1455_v35 = vld [vmem:[#allocation2 + $0x48] sm:$0x7]  ;;  %v3208_v20 = vsub.f32 %v1462_v62, %v3187_v7 }
  0xc2   :  { %723 = vmatpush1.msra.mxu1 %v2901_v14  ;;  %2572 = vmatpush3.msra.mxu0 %v3068_v27  ;;  %1406 = vst [vmem:[#allocation2 + $0x38] sm:$0x1c] %v1400_v30  ;;  %v889_v14 = vand.u32 4294901760, %v3099_v29  ;;  %v898_v31 = vand.u32 4294901760, %v897_v53  ;;  %v905_v59 = vand.u32 4294901760, %v904_v55  ;;  %v1459_v63 = vsel %vm223_vm3, %v1455_v35, 0 }
  0xc3   :  { %725 = vmatprep.subr.mxu1 %v2930_v39  ;;  %2573 = vmatprep.subr.mxu0 %v2731_v25  ;;  %v3192_v10 = vand.u32 4294901760, %v1459_v63 }
  0xc4   :  { %727 = vmatpush1.msra.mxu1 %v2943_v47  ;;  %2574 = vmatpush3.msra.mxu0 %v3079_v48  ;;  %v3115_v37 = vpop.permute.xlu0 %1416  ;;  %v1368_v38 = vpop.permute.xlu1 %1367  ;;  %v883_v47 = vsub.f32 %v3086_v33, %v882_v13  ;;  %v890_v3 = vsub.f32 %v3099_v29, %v889_v14 }
  0xc5   :  { %729 = vmatprep.subr.mxu1 %v2969_v8  ;;  %2575 = vmatprep.subr.mxu0 %v2731_v25  ;;  %v1421_v39 = vsel %vm174_vm4, %v1415_v18, %v3115_v37  ;;  %v1375_v41 = vsel %vm127_vm1, %v1368_v38, %v1370_v24 }
  0xc6   :  { %731 = vmatpush1.msra.mxu1 %v2994_v34  ;;  %2576 = vmatpush3.msra.mxu0 %v3088_v56  ;;  %1427 = vst [vmem:[#allocation2 + $0x38] sm:$0xe0] %v1421_v39  ;;  %1381 = vst [vmem:[#allocation2 + $0x8] ss:$20 sps:$4 sm:$0x83] %v1375_v41   ;;  %v891_v6 = vand.u32 4294901760, %v890_v3 }
  0xc7   :  { %733 = vmatprep.subr.mxu1 %v3006_v46  ;;  %2577 = vmatprep.subr.mxu0 %v2731_v25 }
  0xc8   :  { %735 = vmatpush1.msra.mxu1 %v3009_v50  ;;  %2578 = vmatpush3.msra.mxu0 %v3096_v28  ;;  %v1392_v8 = vpop.permute.xlu0 %1391  ;;  %v1413_v34 = vpop.permute.xlu1 %1412  ;;  %v884_v50 = vand.u32 4294901760, %v883_v47 }
  0xc9   :  { %768 = vmatprep.mubr.f32.mxu1 %v2731_v25  ;;  %2579 = vmatprep.mubr.msk.f32.mxu0 %vm2733_vm10, %v2731_v25  ;;  %v1399_v45 = vsel %vm152_vm2, %v1392_v8, %v1394_v44  ;;  %v1420_v46 = vsel %vm174_vm4, %v1413_v34, %v1415_v18  ;;  %v3214_v44 = vsub.f32 %v1459_v63, %v3192_v10 }
  0xca   :  { %2582 = vmatprep.subr.mxu1 %v2731_v25  ;;  %2593 = vmatprep.subr.mxu0 %v2731_v25  ;;  %1405 = vst [vmem:[#allocation2 + $0x8] sm:$0x1c] %v1399_v45  ;;  %1426 = vst [vmem:[#allocation2 + $0x8] sm:$0xe0] %v1420_v46 }
  0xcb   :  { %770 = vmatmul.mubr.f32.vlgmr.msra.gmra.mxu1 %v2966_v1  ;;  %2580 = vmatmul.mubr.f32.vlgmr.msra.gmra.mxu0 %v3012_v51  ;;  %v1583_v38 = vand.u32 4294901760, %v3214_v44 }
  0xcc   :  { %2583 = vmatpush3.msra.mxu1 %v884_v50  ;;  %2594 = vmatpush3.msra.mxu0 %v3086_v33  ;;  %v1306_v54 = vpop.permute.xlu0 %1305  ;;  %v3153_v15 = vpop.permute.xlu1 %1307 }
  0xcd   :  { %2584 = vmatprep.subr.mxu1 %v2731_v25  ;;  %2595 = vmatprep.subr.mxu0 %v2731_v25  ;;  %v1312_v32 = vsel %vm60_vm5, %v1306_v54, %v3153_v15  ;;  %v1453_v4 = vld [vmem:[#allocation2 + $0x38] sm:$0xff]  ;;  %v1584_v3 = vsub.f32 %v3214_v44, %v1583_v38 }
  0xce   :  { %2585 = vmatpush3.msra.mxu1 %v891_v6  ;;  %2596 = vmatpush3.msra.mxu0 %v3099_v29  ;;  %1318 = vst [vmem:[#allocation2 + $0x50] ss:$-76 sps:$4 sm:$0xc1] %v1312_v32   ;;  %v3196_v16 = vand.u32 4294901760, %v1453_v4 }
  0xcf   :  { %2586 = vmatprep.subr.mxu1 %v2731_v25  ;;  %2597 = vmatprep.subr.mxu0 %v2731_v25  ;;  %v1585_v32 = vand.u32 4294901760, %v1584_v3 }
  0xd0   :  { %2587 = vmatpush3.msra.mxu1 %v898_v31  ;;  %2598 = vmatpush3.msra.mxu0 %v3109_v36  ;;  %v1330_v60 = vpop.permute.xlu0 %1329  ;;  %v3166_v61 = vpop.permute.xlu1 %1331  ;;  %v3219_v52 = vsub.f32 %v1453_v4, %v3196_v16 }
  0xd1   :  { %2588 = vmatprep.subr.mxu1 %v2731_v25  ;;  %2599 = vmatprep.subr.mxu0 %v2731_v25  ;;  %v1336_v42 = vsel %vm85_vm6, %v1330_v60, %v3166_v61  ;;  %v1452_v49 = vld [vmem:[#allocation2 + $0x8] sm:$0xff] }
  0xd2   :  { %2589 = vmatpush3.msra.mxu1 %v905_v59  ;;  %2600 = vmatpush3.msra.mxu0 %v3119_v40  ;;  %1342 = vst [vmem:[#allocation2 + $0x50] sm:$0xe] %v1336_v42  ;;  %v3201_v26 = vand.u32 4294901760, %v1452_v49  ;;  %v1589_v40 = vand.u32 4294901760, %v3219_v52 }
  0xd3   :  { %2590 = vmatprep.mubr.msk.f32.mxu1 %vm2733_vm10, %v2731_v25  ;;  %2601 = vmatprep.mubr.msk.f32.mxu0 %vm2733_vm10, %v2731_v25 }
  0xd4   :  { %2604 = vmatprep.subr.mxu1 %v2731_v25  ;;  %2615 = vmatprep.subr.mxu0 %v2731_v25  ;;  %v1349_v0 = vpop.permute.xlu0 %1348  ;;  %v3181_v2 = vpop.permute.xlu1 %1350  ;;  %v3225_v33 = vsub.f32 %v1452_v49, %v3201_v26  ;;  %v1590_v45 = vsub.f32 %v3219_v52, %v1589_v40 }
  0xd5   :  { %2591 = vmatmul.mubr.f32.vlgmr.msra.gmra.mxu1 %v2966_v1  ;;  %2602 = vmatmul.mubr.f32.vlgmr.msra.gmra.mxu0 %v2972_v9  ;;  %v1355_v5 = vsel %vm105_vm7, %v1349_v0, %v3181_v2 }
  0xd6   :  { %2605 = vmatpush3.msra.mxu1 %v3068_v27  ;;  %2616 = vmatpush3.msra.mxu0 %v882_v13  ;;  %1361 = vst [vmem:[#allocation2 + $0x50] sm:$0x70] %v1355_v5  ;;  %v1577_v13 = vand.u32 4294901760, %v3208_v20  ;;  %v1595_v47 = vand.u32 4294901760, %v3225_v33  ;;  %v1591_v57 = vand.u32 4294901760, %v1590_v45 }
  0xd7   :  { %2606 = vmatprep.subr.mxu1 %v2731_v25  ;;  %2617 = vmatprep.subr.mxu0 %v2731_v25 }
  0xd8   :  { %2607 = vmatpush3.msra.mxu1 %v3079_v48  ;;  %2618 = vmatpush3.msra.mxu0 %v889_v14  ;;  %v1304_v17 = vpop.permute.xlu0 %1303  ;;  %v1328_v24 = vpop.permute.xlu1 %1327  ;;  %v1578_v8 = vsub.f32 %v3208_v20, %v1577_v13 }
  0xd9   :  { %2608 = vmatprep.subr.mxu1 %v2731_v25  ;;  %2619 = vmatprep.subr.mxu0 %v2731_v25  ;;  %v1311_v19 = vsel %vm60_vm5, %v1304_v17, %v1306_v54  ;;  %v1335_v21 = vsel %vm85_vm6, %v1328_v24, %v1330_v60 }
  0xda   :  { %2609 = vmatpush3.msra.mxu1 %v3088_v56  ;;  %2620 = vmatpush3.msra.mxu0 %v896_v58  ;;  %1317 = vst [vmem:[#allocation2 + $0x18] ss:$28 sps:$4 sm:$0xc1] %v1311_v19   ;;  %1341 = vst [vmem:[#allocation2 + $0x18] sm:$0xe] %v1335_v21  ;;  %v1579_v6 = vand.u32 4294901760, %v1578_v8 }
  0xdb   :  { %2610 = vmatprep.subr.mxu1 %v2731_v25  ;;  %2621 = vmatprep.subr.mxu0 %v2731_v25 }
  0xdc   :  { %2611 = vmatpush3.msra.mxu1 %v3096_v28  ;;  %2622 = vmatpush3.msra.mxu0 %v903_v43  ;;  %v1347_v18 = vpop.permute.xlu0 %1346  ;;  %v1285_v29 = vpop.permute.xlu1 %1284 }
  0xdd   :  { %2612 = vmatprep.mubr.msk.f32.mxu1 %vm2733_vm10, %v2731_v25  ;;  %2623 = vmatprep.mubr.msk.f32.mxu0 %vm2733_vm10, %v2731_v25  ;;  %v1354_v30 = vsel %vm105_vm7, %v1347_v18, %v1349_v0  ;;  %v1450_v36 = vld [vmem:[#allocation2 + $0x50] sm:$0xff] }
  0xde   :  { %2626 = vmatprep.subr.mxu1 %v2731_v25  ;;  %1492 = vmatprep.subr.mxu0 %v3187_v7  ;;  %1360 = vst [vmem:[#allocation2 + $0x18] sm:$0x70] %v1354_v30  ;;  %v3236_v14 = vand.u32 4294901760, %v1450_v36 }
  0xdf   :  { %2613 = vmatmul.mubr.f32.vlgmr.msra.gmra.mxu1 %v2985_v23  ;;  %2624 = vmatmul.mubr.f32.vlgmr.msra.gmra.mxu0 %v2966_v1 }
  0xe0   :  { %2627 = vmatpush3.msra.mxu1 %v3068_v27  ;;  %1494 = vmatpush1.msra.mxu0 %v3192_v10  ;;  %v3243_v39 = vpop.permute.xlu0 %1286  ;;  %v1283_v41 = vpop.permute.xlu1 %1282  ;;  %v3247_v58 = vsub.f32 %v1450_v36, %v3236_v14 }
  0xe1   :  { %2628 = vmatprep.subr.mxu1 %v2731_v25  ;;  %1496 = vmatprep.subr.mxu0 %v3196_v16  ;;  %v1291_v27 = vsel %vm38_vm9, %v1285_v29, %v3243_v39  ;;  %v1290_v34 = vsel %vm38_vm9, %v1283_v41, %v1285_v29 }
  0xe2   :  { %2629 = vmatpush3.msra.mxu1 %v3079_v48  ;;  %1498 = vmatpush1.msra.mxu0 %v3201_v26  ;;  %1297 = vst [vmem:[#allocation2] sm:$0x38] %v1291_v27  ;;  %1296 = vst [vmem:[#allocation2 + $0x30] sm:$0x38] %v1290_v34  ;;  %v1601_v43 = vand.u32 4294901760, %v3247_v58  ;;  %v1596_v48 = vsub.f32 %v3225_v33, %v1595_v47 }
  0xe3   :  { %2630 = vmatprep.subr.mxu1 %v2731_v25  ;;  %2634 = vmatprep.mubr.msk.f32.mxu1 %vm2733_vm10, %v2731_v25 }
  0xe4   :  { %2631 = vmatpush3.msra.mxu1 %v3088_v56  ;;  %1500 = vmatprep.subr.mxu0 %v3236_v14  ;;  %v1436_v46 = vpop.permute.xlu0 %1435  ;;  %v1374_v50 = vpop.permute.xlu1 %1373  ;;  %v1602_v53 = vsub.f32 %v3247_v58, %v1601_v43 }
  0xe5   :  { %2632 = vmatprep.subr.mxu1 %v2731_v25  ;;  %v1439_v54 = vsel %vm192_vm0, %v3046_v11, %v1436_v46  ;;  %v1377_v56 = vsel %vm127_vm1, %v3077_v22, %v1374_v50  ;;  %v1449_v55 = vld [vmem:[#allocation2 + $0x18] sm:$0xff]  ;;  %1539 = vmatprep.mubr.f32.mxu0 %v2731_v25  ;;  %v1597_v11 = vand.u32 4294901760, %v1596_v48 }
  0xe6   :  { %2633 = vmatpush3.msra.mxu1 %v3096_v28  ;;  %1445 = vst [vmem:[#allocation2 + $0x40] sm:$0x7] %v1439_v54  ;;  %1383 = vst [vmem:[#allocation2 + $0x28] ss:$-4 sps:$4 sm:$0x83] %v1377_v56   ;;  %v3284_v31 = vand.u32 4294901760, %v1449_v55 }
  0xe7   :  { %1580 = vmatprep.subr.mxu1 %v1579_v6  ;;  %2635 = vmatmul.mubr.f32.vlgmr.msra.gmra.mxu1 %v2966_v1  ;;  %v1603_v59 = vand.u32 4294901760, %v1602_v53 }
  0xe8   :  { %1586 = vmatpush1.msra.mxu1 %v1585_v32  ;;  %v1398_v60 = vpop.permute.xlu0 %1397  ;;  %v1419_v35 = vpop.permute.xlu1 %1418  ;;  %1502 = vmatpush1.msra.mxu0 %v3284_v31  ;;  %v3289_v22 = vsub.f32 %v1449_v55, %v3284_v31 }
  0xe9   :  { %1592 = vmatprep.subr.mxu1 %v1591_v57  ;;  %v1401_v28 = vsel %vm152_vm2, %v3094_v12, %v1398_v60  ;;  %v1422_v42 = vsel %vm174_vm4, %v3115_v37, %v1419_v35  ;;  %v1447_v62 = vld [vmem:[#allocation2] sm:$0xff]  ;;  %v1446_v63 = vld [vmem:[#allocation2 + $0x30] sm:$0xff]  ;;  %1655 = vmatprep.mubr.f32.mxu1 %v2731_v25 }
  0xea   :  { %1598 = vmatpush1.msra.mxu1 %v1597_v11  ;;  %1407 = vst [vmem:[#allocation2 + $0x28] sm:$0x1c] %v1401_v28  ;;  %1428 = vst [vmem:[#allocation2 + $0x28] sm:$0xe0] %v1422_v42  ;;  %v3296_v0 = vand.u32 4294901760, %v1447_v62  ;;  %v3298_v4 = vand.u32 4294901760, %v1446_v63 }
  0xeb   :  { %v1607_v5 = vand.u32 4294901760, %v3289_v22  ;;  %1604 = vmatprep.subr.mxu1 %v1603_v59 }
  0xec   :  { %v1310_v49 = vpop.permute.xlu0 %1309  ;;  %v1334_v17 = vpop.permute.xlu1 %1333  ;;  %1504 = vmatprep.subr.mxu0 %v3296_v0  ;;  %v1618_v12 = vsub.f32 %v1446_v63, %v3298_v4  ;;  %v1612_v24 = vsub.f32 %v1447_v62, %v3296_v0 }
  0xed   :  { %v1608_v37 = vsub.f32 %v3289_v22, %v1607_v5  ;;  %v1313_v19 = vsel %vm60_vm5, %v3153_v15, %v1310_v49  ;;  %v1337_v21 = vsel %vm85_vm6, %v3166_v61, %v1334_v17  ;;  %1506 = vmatpush1.msra.mxu0 %v3298_v4  ;;  %v1457_v45 = vld [vmem:[#allocation2 + $0x40] sm:$0x7] }
  0xee   :  { %1319 = vst [vmem:[#allocation2 + $0x20] ss:$60 sps:$4 sm:$0xc1] %v1313_v19   ;;  %1343 = vst [vmem:[#allocation2 + $0x20] sm:$0xe] %v1337_v21  ;;  %1689 = vmatprep.subr.mxu0 %v3208_v20  ;;  %1545 = vmatmul.mubr.f32.vlgmr.msra.gmra.mxu0 %v3012_v51  ;;  %v1613_v29 = vand.u32 4294901760, %v1612_v24 }
  0xef   :  { %v1609_v18 = vand.u32 4294901760, %v1608_v37  ;;  %v1619_v30 = vand.u32 4294901760, %v1618_v12  ;;  %1692 = vmatpush1.msra.mxu0 %v3214_v44  ;;  %1743 = vmatprep.mubr.f32.mxu0 %v2731_v25 }
  0xf0   :  { %v1353_v36 = vpop.permute.xlu0 %1352  ;;  %v1289_v15 = vpop.permute.xlu1 %1288  ;;  %1695 = vmatprep.subr.mxu0 %v3219_v52  ;;  %v1614_v61 = vsub.f32 %v1612_v24, %v1613_v29 }
  0xf1   :  { %1610 = vmatpush1.msra.mxu1 %v1609_v18  ;;  %v1620_v41 = vsub.f32 %v1618_v12, %v1619_v30  ;;  %v1356_v8 = vsel %vm105_vm7, %v3181_v2, %v1353_v36  ;;  %v1292_v27 = vsel %vm38_vm9, %v3243_v39, %v1289_v15  ;;  %1698 = vmatpush1.msra.mxu0 %v3225_v33  ;;  %v1465_v2 = vsel %vm223_vm3, %v1457_v45, 0  ;;  %v1454_v39 = vld [vmem:[#allocation2 + $0x28] sm:$0xff] }
  0xf2   :  { %1362 = vst [vmem:[#allocation2 + $0x20] sm:$0x70] %v1356_v8  ;;  %1298 = vst [vmem:[#allocation2 + $0x58] sm:$0x38] %v1292_v27  ;;  %1701 = vmatprep.subr.mxu0 %v3247_v58  ;;  %v1615_v34 = vand.u32 4294901760, %v1614_v61  ;;  %v3337_v20 = vand.u32 4294901760, %v1465_v2 }
  0xf3   :  { %v1621_v3 = vand.u32 4294901760, %v1620_v41  ;;  %1704 = vmatpush1.msra.mxu0 %v3289_v22 }
  0xf4   :  { %1616 = vmatprep.subr.mxu1 %v1615_v34  ;;  %1707 = vmatprep.subr.mxu0 %v1612_v24  ;;  %v3349_v33 = vsub.f32 %v1465_v2, %v3337_v20 }
  0xf5   :  { %1622 = vmatpush1.msra.mxu1 %v1621_v3  ;;  %1710 = vmatpush1.msra.mxu0 %v1618_v12 }
  0xf6   :  { %1657 = vmatmul.mubr.f32.vlgmr.msra.gmra.mxu1 %v2966_v1  ;;  %1777 = vmatprep.subr.mxu1 %v3187_v7 }
  0xf7   :  { %1861 = vmatprep.subr.mxu0 %v1577_v13  ;;  %1746 = vmatmul.mubr.f32.vlgmr.msra.gmra.mxu0 %v2972_v9  ;;  %v3343_v13 = vand.u32 4294901760, %v1454_v39 }
  0xf8   :  { %1779 = vmatpush1.msra.mxu1 %v3192_v10  ;;  %1865 = vmatpush1.msra.mxu0 %v1583_v38 }
  0xf9   :  { %1781 = vmatprep.subr.mxu1 %v3196_v16  ;;  %1869 = vmatprep.subr.mxu0 %v1589_v40  ;;  %v1451_v44 = vld [vmem:[#allocation2 + $0x20] sm:$0xff]  ;;  %v1448_v52 = vld [vmem:[#allocation2 + $0x58] sm:$0xff]  ;;  %v3357_v40 = vsub.f32 %v1454_v39, %v3343_v13 }
  0xfa   :  { %1783 = vmatpush1.msra.mxu1 %v3201_v26  ;;  %1873 = vmatpush1.msra.mxu0 %v1595_v47  ;;  %v3351_v38 = vand.u32 4294901760, %v1451_v44  ;;  %v3359_v47 = vand.u32 4294901760, %v1448_v52 }
  0xfb   :  { %1785 = vmatprep.subr.mxu1 %v3236_v14  ;;  %1877 = vmatprep.subr.mxu0 %v1601_v43  ;;  %v2116_v43 = vand.u32 4294901760, %v3349_v33  ;;  %v2123_v48 = vand.u32 4294901760, %v3357_v40 }
  0xfc   :  { %1787 = vmatpush1.msra.mxu1 %v3284_v31  ;;  %1881 = vmatpush1.msra.mxu0 %v1607_v5  ;;  %v2129_v58 = vsub.f32 %v1451_v44, %v3351_v38 }
  0xfd   :  { %1789 = vmatprep.subr.mxu1 %v3296_v0  ;;  %1885 = vmatprep.subr.mxu0 %v1613_v29 }
  0xfe   :  { %1791 = vmatpush1.msra.mxu1 %v3298_v4  ;;  %1824 = vmatprep.mubr.f32.mxu1 %v2731_v25 }
  0xff   :  { %1889 = vmatpush1.msra.mxu0 %v1619_v30  ;;  %1828 = vmatmul.mubr.f32.vlgmr.msra.gmra.mxu1 %v2985_v23 }
 0x100   :  { %1922 = vmatprep.mubr.f32.mxu0 %v2731_v25  ;;  %1955 = vmatprep.subr.mxu1 %v3187_v7  ;;  %v2136_v7 = vsub.f32 %v1448_v52, %v3359_v47 }
 0x101   :  { %2637 = vmatprep.subr.mxu0 %v2731_v25  ;;  %1924 = vmatmul.mubr.f32.vlgmr.msra.gmra.mxu0 %v2966_v1 }
 0x102   :  { %1957 = vmatpush1.msra.mxu1 %v3192_v10  ;;  %2638 = vmatpush3.msra.mxu0 %v3337_v20  ;;  %v2117_v10 = vsub.f32 %v3349_v33, %v2116_v43 }
 0x103   :  { %1959 = vmatprep.subr.mxu1 %v3196_v16  ;;  %2639 = vmatprep.subr.mxu0 %v2731_v25  ;;  %v2130_v16 = vand.u32 4294901760, %v2129_v58 }
 0x104   :  { %1961 = vmatpush1.msra.mxu1 %v3201_v26  ;;  %2640 = vmatpush3.msra.mxu0 %v3343_v13  ;;  %v2124_v26 = vsub.f32 %v3357_v40, %v2123_v48  ;;  %v2118_v46 = vand.u32 4294901760, %v2117_v10 }
 0x105   :  { %1963 = vmatprep.subr.mxu1 %v3236_v14  ;;  %2641 = vmatprep.subr.mxu0 %v2731_v25  ;;  %v2137_v14 = vand.u32 4294901760, %v2136_v7  ;;  %v2131_v50 = vsub.f32 %v2129_v58, %v2130_v16 }
 0x106   :  { %1965 = vmatpush1.msra.mxu1 %v3284_v31  ;;  %2642 = vmatpush3.msra.mxu0 %v3351_v38  ;;  %v2125_v53 = vand.u32 4294901760, %v2124_v26 }
 0x107   :  { %1967 = vmatprep.subr.mxu1 %v3296_v0  ;;  %2643 = vmatprep.subr.mxu0 %v2731_v25  ;;  %v2138_v6 = vsub.f32 %v2136_v7, %v2137_v14  ;;  %v2132_v54 = vand.u32 4294901760, %v2131_v50 }
 0x108   :  { %1969 = vmatpush1.msra.mxu1 %v3298_v4  ;;  %2002 = vmatprep.mubr.f32.mxu1 %v2731_v25 }
 0x109   :  { %2644 = vmatpush3.msra.mxu0 %v3359_v47  ;;  %2004 = vmatmul.mubr.f32.vlgmr.msra.gmra.mxu1 %v2966_v1 }
 0x10a   :  { %2645 = vmatprep.mubr.msk.f32.mxu0 %vm2733_vm10, %v2731_v25  ;;  %2648 = vmatprep.subr.mxu1 %v2731_v25 }
 0x10b   :  { %2659 = vmatprep.subr.mxu0 %v2731_v25  ;;  %2646 = vmatmul.mubr.f32.vlgmr.msra.gmra.mxu0 %v3012_v51  ;;  %v2139_v51 = vand.u32 4294901760, %v2138_v6 }
 0x10c   :  { %2649 = vmatpush3.msra.mxu1 %v2118_v46  ;;  %2660 = vmatpush3.msra.mxu0 %v3349_v33 }
 0x10d   :  { %2650 = vmatprep.subr.mxu1 %v2731_v25  ;;  %2661 = vmatprep.subr.mxu0 %v2731_v25 }
 0x10e   :  { %2651 = vmatpush3.msra.mxu1 %v2125_v53  ;;  %2662 = vmatpush3.msra.mxu0 %v3357_v40 }
 0x10f   :  { %2652 = vmatprep.subr.mxu1 %v2731_v25  ;;  %2663 = vmatprep.subr.mxu0 %v2731_v25 }
 0x110   :  { %2653 = vmatpush3.msra.mxu1 %v2132_v54  ;;  %2664 = vmatpush3.msra.mxu0 %v2129_v58 }
 0x111   :  { %2654 = vmatprep.subr.mxu1 %v2731_v25  ;;  %2665 = vmatprep.subr.mxu0 %v2731_v25 }
 0x112   :  { %2655 = vmatpush3.msra.mxu1 %v2139_v51  ;;  %2656 = vmatprep.mubr.msk.f32.mxu1 %vm2733_vm10, %v2731_v25 }
 0x113   :  { %2666 = vmatpush3.msra.mxu0 %v2136_v7  ;;  %2657 = vmatmul.mubr.f32.vlgmr.msra.gmra.mxu1 %v2966_v1 }
 0x114   :  { %2667 = vmatprep.mubr.msk.f32.mxu0 %vm2733_vm10, %v2731_v25  ;;  %2670 = vmatprep.subr.mxu1 %v2731_v25 }
 0x115   :  { %2681 = vmatprep.subr.mxu0 %v2731_v25  ;;  %2668 = vmatmul.mubr.f32.vlgmr.msra.gmra.mxu0 %v2972_v9 }
 0x116   :  { %2671 = vmatpush3.msra.mxu1 %v3337_v20  ;;  %2682 = vmatpush3.msra.mxu0 %v2116_v43 }
 0x117   :  { %2672 = vmatprep.subr.mxu1 %v2731_v25  ;;  %2683 = vmatprep.subr.mxu0 %v2731_v25 }
 0x118   :  { %2673 = vmatpush3.msra.mxu1 %v3343_v13  ;;  %2684 = vmatpush3.msra.mxu0 %v2123_v48 }
 0x119   :  { %2674 = vmatprep.subr.mxu1 %v2731_v25  ;;  %2685 = vmatprep.subr.mxu0 %v2731_v25 }
 0x11a   :  { %2675 = vmatpush3.msra.mxu1 %v3351_v38  ;;  %2686 = vmatpush3.msra.mxu0 %v2130_v16 }
 0x11b   :  { %2676 = vmatprep.subr.mxu1 %v2731_v25  ;;  %2687 = vmatprep.subr.mxu0 %v2731_v25 }
 0x11c   :  { %2677 = vmatpush3.msra.mxu1 %v3359_v47  ;;  %2678 = vmatprep.mubr.msk.f32.mxu1 %vm2733_vm10, %v2731_v25 }
 0x11d   :  { %2688 = vmatpush3.msra.mxu0 %v2137_v14  ;;  %2679 = vmatmul.mubr.f32.vlgmr.msra.gmra.mxu1 %v2985_v23  ;;  %v3433_v23 = vpop.permute.xlu0 %216 }
 0x11e   :  { %2692 = vmatprep.subr.mxu1 %v2731_v25  ;;  %2689 = vmatprep.mubr.msk.f32.mxu0 %vm2733_vm10, %v2731_v25 }
 0x11f   :  { %2693 = vmatpush3.msra.mxu1 %v3337_v20  ;;  %2690 = vmatmul.mubr.f32.vlgmr.msra.gmra.mxu0 %v2966_v1 }
 0x120   :  { %2694 = vmatprep.subr.mxu1 %v2731_v25  ;;  %2700 = vmatprep.mubr.msk.f32.mxu1 %vm2733_vm10, %v2731_v25 }
 0x121   :  { %2695 = vmatpush3.msra.mxu1 %v3343_v13 }
 0x122   :  { %2696 = vmatprep.subr.mxu1 %v2731_v25 }
 0x123   :  { %2697 = vmatpush3.msra.mxu1 %v3351_v38 }
 0x124   :  { %2698 = vmatprep.subr.mxu1 %v2731_v25 }
 0x125   :  { %2699 = vmatpush3.msra.mxu1 %v3359_v47 }
 0x126   :  { %2701 = vmatmul.mubr.f32.vlgmr.msra.gmra.mxu1 %v2966_v1 }
 0x16e   :  { %v312_v9 = vpop.f32.mrf.mxu0 }
 0x16f   :  { %v313_v32 = vadd.f32 %v312_v9, %v3433_v23 }
 0x170   :  { %v314_v56 = vpop.f32.mrf.mxu0 }
 0x171   :  { %v315_v31 = vadd.f32 %v314_v56, %v3433_v23 }
 0x177   :  { %v424_v55 = vpop.f32.mrf.mxu1  ;;  %v513_v59 = vpop.f32.mrf.mxu0 }
 0x178   :  { %v425_v11 = vadd.f32 %v424_v55, %v313_v32 }
 0x179   :  { %v426_v57 = vpop.f32.mrf.mxu1  ;;  %v515_v35 = vpop.f32.mrf.mxu0 }
 0x17a   :  { %v427_v60 = vadd.f32 %v426_v57, %v315_v31  ;;  %v514_v22 = vadd.f32 %v513_v59, %v425_v11 }
 0x17c   :  { %v516_v28 = vadd.f32 %v515_v35, %v427_v60 }
 0x181   :  { %v595_v25 = vpop.f32.mrf.mxu1  ;;  %v691_v62 = vpop.f32.mrf.mxu0 }
 0x182   :  { %v596_v1 = vadd.f32 %v595_v25, %v514_v22 }
 0x183   :  { %v597_v42 = vpop.f32.mrf.mxu1  ;;  %v693_v0 = vpop.f32.mrf.mxu0 }
 0x184   :  { %v598_v63 = vadd.f32 %v597_v42, %v516_v28  ;;  %v692_v4 = vadd.f32 %v691_v62, %v596_v1 }
 0x186   :  { %v694_v5 = vadd.f32 %v693_v0, %v598_v63 }
 0x18b   :  { %v771_v49 = vpop.f32.mrf.mxu1  ;;  %v851_v17 = vpop.f32.mrf.mxu0 }
 0x18c   :  { %v772_v12 = vadd.f32 %v771_v49, %v692_v4  ;;  %v852_v29 = vadd.f32 %v851_v17, %v3433_v23 }
 0x18d   :  { %v773_v37 = vpop.f32.mrf.mxu1  ;;  %v2581_v24 = vpop.f32.mrf.mxu0 }
 0x18e   :  { %v1261_v19 = vmax.f32 %v772_v12, 0.0  ;;  %v774_v21 = vadd.f32 %v773_v37, %v694_v5 }
 0x190   :  { %1264 = vst [vmem:[%s3462_s3] sm:$0xff] %v1261_v19  ;;  %v1262_v18 = vmax.f32 %v774_v21, 0.0 }
 0x192   :  { %1265 = vst [vmem:[%s3462_s3 + $0x8] sm:$0xff] %v1262_v18 }
 0x195   :  { %v942_v30 = vpop.f32.mrf.mxu1  ;;  %v1022_v36 = vpop.f32.mrf.mxu0 }
 0x196   :  { %v943_v41 = vadd.f32 %v942_v30, %v852_v29 }
 0x197   :  { %v2592_v15 = vpop.f32.mrf.mxu1  ;;  %v2603_v61 = vpop.f32.mrf.mxu0 }
 0x198   :  { %v1023_v8 = vadd.f32 %v1022_v36, %v943_v41 }
 0x19f   :  { %v1099_v27 = vpop.f32.mrf.mxu1  ;;  %v1182_v34 = vpop.f32.mrf.mxu0 }
 0x1a0   :  { %v1100_v3 = vadd.f32 %v1099_v27, %v1023_v8 }
 0x1a1   :  { %v2614_v45 = vpop.f32.mrf.mxu1  ;;  %v2625_v2 = vpop.f32.mrf.mxu0 }
 0x1a2   :  { %v1183_v39 = vadd.f32 %v1182_v34, %v1100_v3 }
 0x1a7   :  { %v1257_v20 = vpop.f32.mrf.mxu1 }
 0x1a8   :  { %v1258_v44 = vadd.f32 %v1257_v20, %v1183_v39 }
 0x1a9   :  { %v2636_v13 = vpop.f32.mrf.mxu1 }
 0x1aa   :  { %v1263_v52 = vmax.f32 %v1258_v44, 0.0 }
 0x1ac   :  { %1266 = vst [vmem:[%s3462_s3 + $0x10] sm:$0xff] %v1263_v52 }
 0x1ae   :  { %v1546_v33 = vpop.f32.mrf.mxu0 }
 0x1af   :  { %v1547_v47 = vadd.f32 %v1546_v33, %v3433_v23 }
 0x1b0   :  { %v1548_v38 = vpop.f32.mrf.mxu0 }
 0x1b1   :  { %v1549_v58 = vadd.f32 %v1548_v38, %v3433_v23 }
 0x1b6   :  { %v1658_v40 = vpop.f32.mrf.mxu1 }
 0x1b7   :  { %v1747_v7 = vpop.f32.mrf.mxu0  ;;  %v1659_v48 = vadd.f32 %v1658_v40, %v1547_v47 }
 0x1b8   :  { %v1660_v43 = vpop.f32.mrf.mxu1 }
 0x1b9   :  { %v1661_v16 = vadd.f32 %v1660_v43, %v1549_v58  ;;  %v1749_v26 = vpop.f32.mrf.mxu0  ;;  %v1748_v14 = vadd.f32 %v1747_v7, %v1659_v48 }
 0x1bb   :  { %v1750_v53 = vadd.f32 %v1749_v26, %v1661_v16 }
 0x1bf   :  { %v1829_v10 = vpop.f32.mrf.mxu1 }
 0x1c0   :  { %v1830_v6 = vadd.f32 %v1829_v10, %v1748_v14 }
 0x1c1   :  { %v1831_v46 = vpop.f32.mrf.mxu1  ;;  %v1925_v50 = vpop.f32.mrf.mxu0 }
 0x1c2   :  { %v1832_v54 = vadd.f32 %v1831_v46, %v1750_v53  ;;  %v1926_v9 = vadd.f32 %v1925_v50, %v1830_v6 }
 0x1c3   :  { %v1927_v51 = vpop.f32.mrf.mxu0 }
 0x1c4   :  { %v1928_v55 = vadd.f32 %v1927_v51, %v1832_v54 }
 0x1c9   :  { %v2005_v56 = vpop.f32.mrf.mxu1 }
 0x1ca   :  { %v2006_v32 = vadd.f32 %v2005_v56, %v1926_v9 }
 0x1cb   :  { %v2007_v31 = vpop.f32.mrf.mxu1  ;;  %v2085_v57 = vpop.f32.mrf.mxu0 }
 0x1cc   :  { %v2495_v59 = vmax.f32 %v2006_v32, 0.0  ;;  %v2008_v11 = vadd.f32 %v2007_v31, %v1928_v55  ;;  %v2086_v42 = vadd.f32 %v2085_v57, %v3433_v23 }
 0x1cd   :  { %v2647_v60 = vpop.f32.mrf.mxu0 }
 0x1ce   :  { %2508 = vst [vmem:[%s3462_s3 + $0x18] sm:$0xff] %v2495_v59  ;;  %v2496_v35 = vmax.f32 %v2008_v11, 0.0 }
 0x1d0   :  { %2509 = vst [vmem:[%s3462_s3 + $0x20] sm:$0xff] %v2496_v35 }
 0x1d3   :  { %v2176_v22 = vpop.f32.mrf.mxu1 }
 0x1d4   :  { %v2177_v1 = vadd.f32 %v2176_v22, %v2086_v42 }
 0x1d5   :  { %v2658_v25 = vpop.f32.mrf.mxu1  ;;  %v2256_v28 = vpop.f32.mrf.mxu0 }
 0x1d6   :  { %v2257_v0 = vadd.f32 %v2256_v28, %v2177_v1 }
 0x1d7   :  { %v2669_v62 = vpop.f32.mrf.mxu0 }
 0x1dd   :  { %v2333_v63 = vpop.f32.mrf.mxu1 }
 0x1de   :  { %v2334_v49 = vadd.f32 %v2333_v63, %v2257_v0 }
 0x1df   :  { %v2680_v4 = vpop.f32.mrf.mxu1  ;;  %v2416_v5 = vpop.f32.mrf.mxu0 }
 0x1e0   :  { %v2417_v12 = vadd.f32 %v2416_v5, %v2334_v49 }
 0x1e1   :  { %v2691_v17 = vpop.f32.mrf.mxu0 }
 0x1e6   :  { %v2491_v37 = vpop.f32.mrf.mxu1 }
 0x1e7   :  { %v2492_v24 = vadd.f32 %v2491_v37, %v2417_v12 }
 0x1e8   :  { %v2702_v19 = vpop.f32.mrf.mxu1 }
 0x1e9   :  { %v2497_v21 = vmax.f32 %v2492_v24, 0.0 }
 0x1eb   :  { %2510 = vst [vmem:[%s3462_s3 + $0x28] sm:$0xff] %v2497_v21 }

</bundles_post_ra>
